<compile_context>
chip_gen: v5e
topology: v5e:2x2
jax: 0.10.0
libtpu: 0.0.40
codegen_flags: <defaults>
</compile_context>

<pallas_src>
import jax
import jax.numpy as jnp
from jax.experimental import pallas as pl
from jax.experimental.pallas import tpu as pltpu


def bahdanau_kernel(q_ref, pk_ref, v_ref, mask_ref, wq_ref, we_ref,
                    ctx_ref, alpha_ref):
    # Query projection on the MXU: [bb, H] @ [H, H] -> [bb, H]  (f32).
    q = jnp.dot(q_ref[...], wq_ref[...], preferred_element_type=jnp.float32)

    # Upcast the bf16 (or f32) streams to f32 for the elementwise math.
    pk = pk_ref[...].astype(jnp.float32)            # [bb, M, H]
    v = v_ref[...].astype(jnp.float32)              # [bb, M, 2H]

    # tanh(query + proj_key): [bb, 1, H] + [bb, M, H] -> [bb, M, H]  (VPU/EUP).
    t = jnp.tanh(q[:, None, :] + pk)

    # Energy layer: contract hidden dim with w_e -> scores [bb, M] (M on lanes).
    scores = jnp.sum(t * we_ref[...], axis=-1)      # [bb, M]

    # masked_fill(mask == 0, -inf); mask is lane-dense int32 [bb, M].
    scores = jnp.where(mask_ref[...] == 0, -jnp.inf, scores)

    # Softmax over source positions (lane axis).
    m = jnp.max(scores, axis=-1, keepdims=True)     # [bb, 1]
    e = jnp.exp(scores - m)                         # [bb, M]
    denom = jnp.sum(e, axis=-1, keepdims=True)      # [bb, 1]
    # approx=True would route to the EUP slot; kept exact for tight tolerance.
    alphas = e * pl.reciprocal(denom, approx=False)  # [bb, M]

    # Sublane-dense 2D alphas store.
    alpha_ref[...] = alphas.astype(alpha_ref.dtype)

    # Context on the MXU: [bb, 1, M] @ [bb, M, 2H] -> [bb, 1, 2H] -> [bb, 2H].
    ctx3 = jnp.einsum("bqm,bmd->bqd", alphas[:, None, :], v,
                      preferred_element_type=jnp.float32)
    ctx_ref[...] = ctx3[:, 0, :].astype(ctx_ref.dtype)


def _pick_batch_block(B, M, H, H2, pk_bytes, v_bytes):
    """Batch tile (rows) sized to an explicit VMEM budget.

    Counts double-buffered input streams + output tiles.  Budget is kept well
    under v7x's 64 MiB physical VMEM (and the 48 MiB vmem_limit we request).
    For B >= 16 we guarantee >= 2 grid steps so both v7x TensorCores get work.
    """
    per_row = 2 * (M * H * pk_bytes          # proj_key tile (double-buffered)
                   + M * H2 * v_bytes        # value tile
                   + (H + M) * 4             # query + mask tiles (f32/int32)
                   + (H2 + M) * 4)           # ctx + alphas output tiles (f32)
    budget = 32 * 1024 * 1024
    cap = max(8, min(1024, (budget // per_row) // 8 * 8))
    if B < 16 and B <= cap:
        return int(B)                        # tiny batch: one step, full blocks
    bb = max(8, ((pl.cdiv(B, 2) + 7) // 8) * 8)   # >= 2 steps, rows % 8 == 0
    return int(min(cap, bb))


@jax.jit
def bahdanau_attention(query, proj_key, value, mask, wq_t, we):
    """query [B,1,H] f32, proj_key [B,M,H], value [B,M,2H] (bf16 or f32),
    mask [B,M] (0/1).  wq_t = query_layer.weight.T [H,H]; we = energy_layer
    weight [1,H].  Returns (context [B,1,2H] f32, alphas [B,1,M] f32)."""
    B, _, H = query.shape
    M = proj_key.shape[1]
    H2 = value.shape[2]

    q2d = query.reshape(B, H).astype(jnp.float32)
    msk = mask.astype(jnp.int32)
    # proj_key / value are NOT cast or padded here: they stream to the kernel
    # in their storage dtype (bf16 halves the dominant HBM traffic).

    bb = _pick_batch_block(B, M, H, H2,
                           jnp.dtype(proj_key.dtype).itemsize,
                           jnp.dtype(value.dtype).itemsize)
    grid = (pl.cdiv(B, bb),)

    ctx2d, alphas2d = pl.pallas_call(
        bahdanau_kernel,
        out_shape=(
            jax.ShapeDtypeStruct((B, H2), jnp.float32),
            jax.ShapeDtypeStruct((B, M), jnp.float32),
        ),
        grid_spec=pltpu.PrefetchScalarGridSpec(
            num_scalar_prefetch=0,
            grid=grid,
            in_specs=[
                pl.BlockSpec((bb, H), lambda b: (b, 0)),          # query
                pl.BlockSpec((bb, M, H), lambda b: (b, 0, 0)),    # proj_key
                pl.BlockSpec((bb, M, H2), lambda b: (b, 0, 0)),   # value
                pl.BlockSpec((bb, M), lambda b: (b, 0)),          # mask
                pl.BlockSpec((H, H), lambda b: (0, 0)),           # W_q^T
                pl.BlockSpec((1, H), lambda b: (0, 0)),           # w_e
            ],
            out_specs=[
                pl.BlockSpec((bb, H2), lambda b: (b, 0)),         # context (2D)
                pl.BlockSpec((bb, M), lambda b: (b, 0)),          # alphas  (2D)
            ],
        ),
        compiler_params=pltpu.CompilerParams(
            dimension_semantics=("parallel",),
            vmem_limit_bytes=48 * 1024 * 1024),
    )(q2d, proj_key, value, msk,
      wq_t.astype(jnp.float32), we.astype(jnp.float32))

    return ctx2d.reshape(B, 1, H2), alphas2d.reshape(B, 1, M)


def reference(query, proj_key, value, mask, wq_t, we):
    q = jnp.einsum("bij,jk->bik", query, wq_t)                   # [B,1,H]
    scores = jnp.sum(jnp.tanh(q + proj_key) * we[0], axis=-1)    # [B,M]
    scores = scores[:, None, :]                                  # [B,1,M]
    scores = jnp.where(mask[:, None, :] == 0, -jnp.inf, scores)
    alphas = jax.nn.softmax(scores, axis=-1)
    context = jnp.einsum("bqm,bmd->bqd", alphas, value)
    return context, alphas


if __name__ == "__main__":
    B, M, H = 2, 8, 32
    key = jax.random.PRNGKey(0)
    k1, k2, k3, k4, k5 = jax.random.split(key, 5)

    # Parameters (shapes follow nn.Linear(..., bias=False) in __init__).
    wq = jax.random.normal(k1, (H, H), jnp.float32) * 0.1    # query_layer.weight [out,in]
    we = jax.random.normal(k2, (1, H), jnp.float32) * 0.1    # energy_layer.weight [1,H]
    # key_layer.weight exists in __init__ but is unused in forward (proj_key is
    # supplied precomputed), same as PyTorch — not materialized here.

    # Inputs.
    query = jax.random.normal(k3, (B, 1, H), jnp.float32)
    proj_key = jax.random.normal(k4, (B, M, H), jnp.float32)
    value = jax.random.normal(k5, (B, M, 2 * H), jnp.float32)
    mask = jnp.array([[1, 1, 1, 1, 1, 0, 0, 0],
                      [1, 1, 1, 1, 1, 1, 1, 0]], dtype=jnp.int32)  # [B, M]

    wq_t = wq.T  # [H_in, H_out] for right-multiplication in the kernel

    # Feed the two HBM-dominant tensors in bf16 (kernel upcasts to f32 for the
    # math).  The reference uses the same bf16-rounded values so the check
    # isolates kernel error from the deliberate storage quantization.
    pk_bf16 = proj_key.astype(jnp.bfloat16)
    val_bf16 = value.astype(jnp.bfloat16)

    ctx, alphas = bahdanau_attention(query, pk_bf16, val_bf16, mask, wq_t, we)
    jax.block_until_ready((ctx, alphas))

    ctx_ref, alphas_ref = reference(query,
                                    pk_bf16.astype(jnp.float32),
                                    val_bf16.astype(jnp.float32),
                                    mask, wq_t, we)
    assert ctx.shape == (B, 1, 2 * H) and alphas.shape == (B, 1, M)
    assert jnp.allclose(alphas, alphas_ref, atol=1e-5, rtol=1e-5)
    assert jnp.allclose(ctx, ctx_ref, atol=1e-4, rtol=1e-4)

    print("KERNEL_OK")
</pallas_src>

<mosaic_0001>
module attributes {stable_mosaic.version = 11 : i64} {
  func.func @bahdanau_kernel(%arg0: i32, %arg1: memref<2x32xf32, #tpu.memory_space<vmem>>, %arg2: memref<2x8x32xbf16, #tpu.memory_space<vmem>>, %arg3: memref<2x8x64xbf16, #tpu.memory_space<vmem>>, %arg4: memref<2x8xi32, #tpu.memory_space<vmem>>, %arg5: memref<32x32xf32, #tpu.memory_space<vmem>>, %arg6: memref<1x32xf32, #tpu.memory_space<vmem>>, %arg7: memref<2x64xf32, #tpu.memory_space<vmem>>, %arg8: memref<2x8xf32, #tpu.memory_space<vmem>>) attributes {dimension_semantics = [#tpu.dimension_semantics<parallel>], iteration_bounds = array<i64: 1>, scalar_prefetch = 0 : i64, scratch_operands = 0 : i64, tpu.core_type = #tpu.core_type<tc>, window_params = [{transform_indices = @transform_0, window_bounds = array<i64: 2, 32>}, {transform_indices = @transform_1, window_bounds = array<i64: 2, 8, 32>}, {transform_indices = @transform_2, window_bounds = array<i64: 2, 8, 64>}, {transform_indices = @transform_3, window_bounds = array<i64: 2, 8>}, {pipeline_mode = #tpu.pipeline_mode<synchronous>, transform_indices = @transform_4, window_bounds = array<i64: 32, 32>}, {pipeline_mode = #tpu.pipeline_mode<synchronous>, transform_indices = @transform_5, window_bounds = array<i64: 1, 32>}, {transform_indices = @transform_6, window_bounds = array<i64: 2, 64>}, {transform_indices = @transform_7, window_bounds = array<i64: 2, 8>}]} {
    %c0 = arith.constant 0 : index
    %c0_0 = arith.constant 0 : index
    %0 = vector.load %arg1[%c0, %c0_0] : memref<2x32xf32, #tpu.memory_space<vmem>>, vector<2x32xf32>
    %c0_1 = arith.constant 0 : index
    %c0_2 = arith.constant 0 : index
    %1 = vector.load %arg5[%c0_1, %c0_2] : memref<32x32xf32, #tpu.memory_space<vmem>>, vector<32x32xf32>
    %cst = arith.constant dense<0.000000e+00> : vector<2x32xf32>
    %2 = tpu.matmul %0, %1, %cst {dimension_numbers = #tpu.dot_dimension_numbers<[1], [0], [0], [1], [0, 0, 1, 1], [], []>} : vector<2x32xf32>, vector<32x32xf32>, vector<2x32xf32> -> vector<2x32xf32>
    %c0_3 = arith.constant 0 : index
    %c0_4 = arith.constant 0 : index
    %c0_5 = arith.constant 0 : index
    %3 = vector.load %arg2[%c0_3, %c0_4, %c0_5] : memref<2x8x32xbf16, #tpu.memory_space<vmem>>, vector<2x8x32xbf16>
    %4 = arith.extf %3 : vector<2x8x32xbf16> to vector<2x8x32xf32>
    %c0_6 = arith.constant 0 : index
    %c0_7 = arith.constant 0 : index
    %c0_8 = arith.constant 0 : index
    %5 = vector.load %arg3[%c0_6, %c0_7, %c0_8] : memref<2x8x64xbf16, #tpu.memory_space<vmem>>, vector<2x8x64xbf16>
    %6 = arith.extf %5 : vector<2x8x64xbf16> to vector<2x8x64xf32>
    %7 = vector.shape_cast %2 : vector<2x32xf32> to vector<2x1x32xf32>
    %8 = vector.broadcast %7 : vector<2x1x32xf32> to vector<2x8x32xf32>
    %9 = arith.addf %8, %4 : vector<2x8x32xf32>
    %10 = math.tanh %9 : vector<2x8x32xf32>
    %c0_9 = arith.constant 0 : index
    %c0_10 = arith.constant 0 : index
    %11 = vector.load %arg6[%c0_9, %c0_10] : memref<1x32xf32, #tpu.memory_space<vmem>>, vector<1x32xf32>
    %12 = vector.shape_cast %11 : vector<1x32xf32> to vector<1x1x32xf32>
    %13 = vector.broadcast %12 : vector<1x1x32xf32> to vector<2x8x32xf32>
    %14 = arith.mulf %10, %13 : vector<2x8x32xf32>
    %cst_11 = arith.constant dense<0.000000e+00> : vector<2x8xf32>
    %15 = vector.multi_reduction <add>, %14, %cst_11 [2] : vector<2x8x32xf32> to vector<2x8xf32>
    %c0_12 = arith.constant 0 : index
    %c0_13 = arith.constant 0 : index
    %16 = vector.load %arg4[%c0_12, %c0_13] : memref<2x8xi32, #tpu.memory_space<vmem>>, vector<2x8xi32>
    %c0_i32 = arith.constant 0 : i32
    %17 = vector.broadcast %c0_i32 : i32 to vector<2x8xi32>
    %18 = arith.cmpi eq, %16, %17 : vector<2x8xi32>
    %cst_14 = arith.constant 0xFF800000 : f32
    %19 = vector.broadcast %cst_14 : f32 to vector<2x8xf32>
    %20 = arith.select %18, %19, %15 : vector<2x8xi1>, vector<2x8xf32>
    %cst_15 = arith.constant dense<0xFF800000> : vector<2xf32>
    %21 = vector.multi_reduction <maximumf>, %20, %cst_15 [1] : vector<2x8xf32> to vector<2xf32>
    %22 = vector.shape_cast %21 : vector<2xf32> to vector<2x1xf32>
    %23 = vector.broadcast %22 : vector<2x1xf32> to vector<2x8xf32>
    %24 = arith.subf %20, %23 : vector<2x8xf32>
    %25 = math.exp %24 : vector<2x8xf32>
    %cst_16 = arith.constant dense<0.000000e+00> : vector<2xf32>
    %26 = vector.multi_reduction <add>, %25, %cst_16 [1] : vector<2x8xf32> to vector<2xf32>
    %27 = vector.shape_cast %26 : vector<2xf32> to vector<2x1xf32>
    %28 = tpu.reciprocal %27 : vector<2x1xf32> -> vector<2x1xf32>
    %29 = vector.broadcast %28 : vector<2x1xf32> to vector<2x8xf32>
    %30 = arith.mulf %25, %29 : vector<2x8xf32>
    %c0_17 = arith.constant 0 : index
    %c0_18 = arith.constant 0 : index
    %31 = vector.load %arg8[%c0_17, %c0_18] : memref<2x8xf32, #tpu.memory_space<vmem>>, vector<2x8xf32>
    tpu.vector_store %arg8[%c0_17, %c0_18], %30 {strides = array<i32>} : memref<2x8xf32, #tpu.memory_space<vmem>>, vector<2x8xf32>,
    %32 = vector.shape_cast %30 : vector<2x8xf32> to vector<2x1x8xf32>
    "tpu.trace_start"() <{level = 10 : i32, message = "bqm,bmd->bqd"}> : () -> ()
    %cst_19 = arith.constant dense<0.000000e+00> : vector<2x1x64xf32>
    %33 = tpu.matmul %32, %6, %cst_19 {dimension_numbers = #tpu.dot_dimension_numbers<[2], [1], [1], [2], [0, 0, 0, 1, 1, 2], [0], [0]>} : vector<2x1x8xf32>, vector<2x8x64xf32>, vector<2x1x64xf32> -> vector<2x1x64xf32>
    "tpu.trace_stop"() : () -> ()
    %34 = vector.shape_cast %33 : vector<2x1x64xf32> to vector<2x64xf32>
    %c0_20 = arith.constant 0 : index
    %c0_21 = arith.constant 0 : index
    %35 = vector.load %arg7[%c0_20, %c0_21] : memref<2x64xf32, #tpu.memory_space<vmem>>, vector<2x64xf32>
    tpu.vector_store %arg7[%c0_20, %c0_21], %34 {strides = array<i32>} : memref<2x64xf32, #tpu.memory_space<vmem>>, vector<2x64xf32>,
    return
  }
  func.func @transform_0(%arg0: i32) -> (i32, i32) {
    %c0_i32 = arith.constant 0 : i32
    %c0_i32_0 = arith.constant 0 : i32
    return %arg0, %c0_i32 : i32, i32
  }
  func.func @transform_1(%arg0: i32) -> (i32, i32, i32) {
    %c0_i32 = arith.constant 0 : i32
    %c0_i32_0 = arith.constant 0 : i32
    %c0_i32_1 = arith.constant 0 : i32
    return %arg0, %c0_i32, %c0_i32_0 : i32, i32, i32
  }
  func.func @transform_2(%arg0: i32) -> (i32, i32, i32) {
    %c0_i32 = arith.constant 0 : i32
    %c0_i32_0 = arith.constant 0 : i32
    %c0_i32_1 = arith.constant 0 : i32
    return %arg0, %c0_i32, %c0_i32_0 : i32, i32, i32
  }
  func.func @transform_3(%arg0: i32) -> (i32, i32) {
    %c0_i32 = arith.constant 0 : i32
    %c0_i32_0 = arith.constant 0 : i32
    return %arg0, %c0_i32 : i32, i32
  }
  func.func @transform_4(%arg0: i32) -> (i32, i32) {
    %c0_i32 = arith.constant 0 : i32
    %c0_i32_0 = arith.constant 0 : i32
    %c0_i32_1 = arith.constant 0 : i32
    return %c0_i32, %c0_i32_0 : i32, i32
  }
  func.func @transform_5(%arg0: i32) -> (i32, i32) {
    %c0_i32 = arith.constant 0 : i32
    %c0_i32_0 = arith.constant 0 : i32
    %c0_i32_1 = arith.constant 0 : i32
    return %c0_i32, %c0_i32_0 : i32, i32
  }
  func.func @transform_6(%arg0: i32) -> (i32, i32) {
    %c0_i32 = arith.constant 0 : i32
    %c0_i32_0 = arith.constant 0 : i32
    return %arg0, %c0_i32 : i32, i32
  }
  func.func @transform_7(%arg0: i32) -> (i32, i32) {
    %c0_i32 = arith.constant 0 : i32
    %c0_i32_0 = arith.constant 0 : i32
    return %arg0, %c0_i32 : i32, i32
  }
}

</mosaic_0001>

<bundles_post_ra>
// kernel: bahdanau_attention.1
= control target key start
LH: loop header
LB: loop body
LE: loop exit
PB: predicated region body
PF: predicated region fallthrough
CT: control target
= control target key end

     0   :  { %13 = vsyncpa [#allocation3], 0  ;;  %s540_s0 = inlined_call_operand.hbm [shape: f32[2,32], index: 0, kind: input, shape index: {}]   ;;  %s541_s1 = inlined_call_operand.hbm [shape: bf16[2,8,32], index: 1, kind: input, shape index: {}]   ;;  %s542_s2 = inlined_call_operand.hbm [shape: bf16[2,8,64], index: 2, kind: input, shape index: {}]   ;;  %s543_s3 = inlined_call_operand.vmem [shape: s32[2,8], index: 3, kind: input, shape index: {}]   ;;  %s544_s4 = inlined_call_operand.hbm [shape: f32[32,32], index: 4, kind: input, shape index: {}]   ;;  %s545_s5 = inlined_call_operand.vmem [shape: f32[1,32], index: 5, kind: input, shape index: {}]   ;;  %s546_s6 = inlined_call_operand.hbm [shape: f32[2,64], index: 6, kind: output, shape index: {0}]   ;;  %s547_s7 = inlined_call_operand.hbm [shape: f32[2,8], index: 7, kind: output, shape index: {1}]  }
   0x1   :  { %14 = vsyncpa [#allocation6], 0 }
   0x2   :  { %15 = vsyncpa [#allocation9], 0 }
   0x3   :  { %16 = vsyncpa [#allocation4], 0  ;;  %s33_s26 = sshll.u32 %s541_s1, 4  ;;  %s34_s26 = int_to_ptr.hbm [resolvable:$true] %s33_s26 }
   0x4   :  { %17 = vsyncpa [#allocation12], 0  ;;  %s458_s27 = smov [#allocation5]   ;;  %s23_s8 = sshll.u32 %s540_s0, 4  ;;  %s24_s8 = int_to_ptr.hbm [resolvable:$true] %s23_s8 }
   0x5   :  { %s35_s28 = sshll.u32 %s458_s27, 4  ;;  %s459_s9 = smov 64   ;;  %s36_s28 = int_to_ptr.vmem [resolvable:$true] %s35_s28 }
   0x6   :  { %s460_s10 = smov 4   ;;  %s461_s11 = smov [#allocation2]  }
   0x7   :  { %41 = dma.hbm_to_vmem [thread:$0]  %s34_s26, 128, %s36_s28, [#allocation6], %s459_s9, %s459_s9, %s460_s10  }
   0x8   :  { %s25_s12 = sshll.u32 %s461_s11, 4  ;;  %s46_s15 = sshll.u32 %s542_s2, 4  ;;  %s26_s12 = int_to_ptr.vmem [resolvable:$true] %s25_s12  ;;  %s47_s15 = int_to_ptr.hbm [resolvable:$true] %s46_s15 }
   0x9   :  { %28 = dma.hbm_to_vmem [thread:$0]  %s24_s8, 32, %s26_s12, [#allocation3]  }
   0xa   :  { %s61_s17 = sshll.u32 %s544_s4, 4  ;;  %s462_s18 = smov [#allocation7]   ;;  %s62_s17 = int_to_ptr.hbm [resolvable:$true] %s61_s17 }
   0xb   :  { %s48_s19 = sshll.u32 %s462_s18, 4  ;;  %s463_s0 = smov [#allocation8]   ;;  %s49_s19 = int_to_ptr.vmem [resolvable:$true] %s48_s19 }
   0xc   :  { %54 = dma.hbm_to_vmem [thread:$0]  %s47_s15, 128, %s49_s19, [#allocation6], %s459_s9, %s459_s9, %s460_s10  }
   0xd   :  { %s63_s20 = sshll.u32 %s463_s0, 4  ;;  %s464_s21 = smov 128   ;;  %s64_s20 = int_to_ptr.vmem [resolvable:$true] %s63_s20 }
   0xe   :  { %s465_s22 = smov 8  }
   0xf   :  { %69 = dma.hbm_to_vmem [thread:$0]  %s62_s17, 512, %s64_s20, [#allocation9], %s464_s21, %s464_s21, %s465_s22  }
  0x10   :  { %448 = dma.done.wait [#allocation3], 32  }
  0x11   :  { %449 = vsyncadd [#allocation3], 4294967264 }
  0x12   :  { %450 = dma.done.wait [#allocation6], 256  }
  0x13   :  { %451 = vsyncadd [#allocation6], 4294967040 }
  0x14   :  { %452 = dma.done.wait [#allocation9], 512  }
  0x15   :  { %453 = vsyncadd [#allocation9], 4294966784  ;;  %v92_v0 = vld [vmem:[#allocation8 + $0x18] sm:$0xff]  ;;  %v91_v1 = vld [vmem:[#allocation8 + $0x10] sm:$0xff]  ;;  %vm93_vm0 = vcmask 261120   ;;  %v151_v22 = vlaneseq  ;;  %vm155_vm1 = vcmask 1041409  }
  0x16   :  { %109 = vmatpush.msra.mxu0 %v92_v0  ;;  %v90_v2 = vld [vmem:[#allocation8 + $0x8] sm:$0xff]  ;;  %v89_v3 = vld [vmem:[#allocation8] sm:$0xff]  ;;  %v278_v5 = vld [vmem:[#allocation5] sm:$0xff]   ;;  %vm159_vm3 = vcmask 58368   ;;  %vm187_vm8 = vcmask 64512   ;;  %s257_s27 = sshll.u32 %s547_s7, 4  ;;  %s258_s27 = int_to_ptr.hbm [resolvable:$true] %s257_s27 }
  0x17   :  { %v88_v4 = vld [vmem:[#allocation2] sm:$0x3]  ;;  %v279_v6 = vunpack.c.l.bf16 %v278_v5  ;;  %v280_v8 = vunpack.c.h.bf16 %v278_v5  ;;  %v152_v23 = vand.u32 127, %v151_v22  ;;  %v282_v36 = vld [vmem:[#allocation7] sm:$0xff]   ;;  %s467_s28 = smov [#allocation10]   ;;  %s246_s9 = sshll.u32 %s546_s6, 4  ;;  %s247_s9 = int_to_ptr.hbm [resolvable:$true] %s246_s9 }
  0x18   :  { %110 = vmatpush.msra.mxu0 %v91_v1  ;;  %v295_v14 = vld [vmem:[%s545_s5] ss:$0 sm:$0xff]  ;;  %v283_v37 = vunpack.c.l.bf16 %v282_v36  ;;  %v284_v38 = vunpack.c.h.bf16 %v282_v36  ;;  %s244_s29 = sshll.u32 %s467_s28, 4  ;;  %vm237_vm9 = vcmask 517120   ;;  %s245_s29 = int_to_ptr.vmem [resolvable:$true] %s244_s29 }
  0x19   :  { %v147_v24 = vld [vmem:[%s543_s3] sm:$0x3]  ;;  %s466_s3 = smov [#allocation11]  }
  0x1a   :  { %111 = vmatpush.msra.mxu0 %v90_v2  ;;  %vm148_vm2 = vcmp.eq.s32.totalorder %v147_v24, 0  ;;  %205 = vmatpush.msra.mxu1 %v283_v37  ;;  %s255_s5 = sshll.u32 %s466_s3, 4  ;;  %s256_s5 = int_to_ptr.vmem [resolvable:$true] %s255_s5 }
  0x1b   :  { %227 = vmatpush.msra.mxu2 %v284_v38 }
  0x1c   :  { %112 = vmatpush.msra.mxu0 %v89_v3 }
  0x1d   :  { %274 = vmatmul.msk.f32.vlgmr.msra.gmra.mxu0 %vm93_vm0, %v88_v4 }
  0x9a   :  { %v114_v7 = vpop.f32.mrf.mxu0 }
  0x9b   :  { %v126_v9 = vrot.slane %v114_v7, 1  ;;  %v127_v10 = vperm.slane %v114_v7, 0 }
  0x9d   :  { %v128_v11 = vperm.slane %v126_v9, 0  ;;  %v131_v12 = vadd.f32 %v279_v6, %v127_v10 }
  0x9f   :  { %v132_v13 = vadd.f32 %v280_v8, %v128_v11  ;;  %296 = vtanh.f32 %v131_v12 }
  0xa1   :  { %298 = vtanh.f32 %v132_v13 }
  0xa5   :  { %v297_v15 = vpop.eup %296 }
  0xa6   :  { %v139_v16 = vmul.f32 %v297_v15, %v295_v14 }
  0xa7   :  { %v299_v18 = vpop.eup %298 }
  0xa8   :  { %v141_v17 = vsel %vm93_vm0, %v139_v16, 0.0  ;;  %v140_v19 = vmul.f32 %v299_v18, %v295_v14 }
  0xa9   :  { %142 = vadd.xlane.f32.xlu0 %v141_v17 }
  0xaa   :  { %v144_v20 = vsel %vm93_vm0, %v140_v19, 0.0 }
  0xb1   :  { %145 = vadd.xlane.f32.xlu0 %v144_v20 }
 0x11c   :  { %v143_v21 = vpop.xlane.xlu0 %142 }
 0x11d   :  { %v153_v26 = vperm.slane %v143_v21, %v152_v23 }
 0x124   :  { %v146_v25 = vpop.xlane.xlu0 %145 }
 0x125   :  { %v154_v27 = vperm.slane %v146_v25, %v152_v23 }
 0x127   :  { %v156_v28 = vsel %vm155_vm1, %v154_v27, %v153_v26 }
 0x128   :  { %v158_v29 = vsel %vm148_vm2, -inf, %v156_v28 }
 0x129   :  { %v160_v30 = vsel %vm159_vm3, %v158_v29, -inf }
 0x12a   :  { %161 = vmax.xlane.f32.xlu1 %v160_v30 }
 0x19d   :  { %v162_v31 = vpop.xlane.xlu1 %161 }
 0x19e   :  { %v163_v32 = vsub.f32 %v158_v29, %v162_v31 }
 0x1a0   :  { %v164_v33 = vmul.f32 1.442695, %v163_v32 }
 0x1a2   :  { %300 = vpow2.f32 %v164_v33 }
 0x1a8   :  { %v301_v34 = vpop.eup %300 }
 0x1a9   :  { %v166_v35 = vsel %vm159_vm3, %v301_v34, 0.0 }
 0x1aa   :  { %167 = vadd.xlane.f32.xlu1 %v166_v35 }
 0x21d   :  { %v168_v39 = vpop.xlane.xlu1 %167 }
 0x21e   :  { %302 = vrcp.f32 %v168_v39  ;;  %v180_v43 = vand.u32 2147483648, %v168_v39  ;;  %v178_v45 = vand.u32 2147483647, %v168_v39  ;;  %vm174_vm5 = vweird.f32 %v168_v39 }
 0x220   :  { %v181_v47 = vor.u32 1.1754944e-38, %v180_v43  ;;  %vm179_vm7 = vcmp.eq.f32.partialorder %v178_v45, 8.507059e+37 }
 0x224   :  { %v303_v40 = vpop.eup %302 }
 0x225   :  { %v170_v41 = vmul.f32 %v303_v40, %v168_v39  ;;  %vm175_vm4 = vweird.f32 %v303_v40 }
 0x226   :  { %vm176_vm6 = vmor %vm174_vm5, %vm175_vm4 }
 0x227   :  { %v171_v42 = vsub.f32 1.0, %v170_v41 }
 0x229   :  { %v172_v44 = vmul.f32 %v303_v40, %v171_v42 }
 0x22b   :  { %v173_v46 = vadd.f32 %v303_v40, %v172_v44 }
 0x22d   :  { %v177_v48 = vsel %vm176_vm6, %v303_v40, %v173_v46 }
 0x22e   :  { %v182_v49 = vsel %vm179_vm7, %v181_v47, %v177_v48 }
 0x22f   :  { %v183_v50 = vmul.f32 %v301_v34, %v182_v49 }
 0x231   :  { %275 = vmatmul.msk.f32.vlgmr.msra.gmra.mxu1 %vm187_vm8, %v183_v50  ;;  %184 = vst.msk [vmem:[#allocation11] sm:$0x3] %vm159_vm3, %v183_v50  ;;  %v186_v51 = vrot.slane %v183_v50, 1 }
 0x232   :  { %260 = dma.vmem_to_hbm [thread:$0]  %s256_s5, 32, %s258_s27, [#allocation12]  }
 0x233   :  { %276 = vmatmul.msk.f32.vlgmr.msra.gmra.mxu2 %vm187_vm8, %v186_v51 }
 0x2ae   :  { %v207_v54 = vpop.f32.mrf.mxu1 }
 0x2b6   :  { %v229_v52 = vpop.f32.mrf.mxu2 }
 0x2b7   :  { %v234_v53 = vrot.slane %v229_v52, 7 }
 0x2b9   :  { %v235_v55 = vsel %vm155_vm1, %v234_v53, %v207_v54 }
 0x2ba   :  { %238 = vst.msk [vmem:[#allocation10] sm:$0x3] %vm237_vm9, %v235_v55 }
 0x2bb   :  { %249 = dma.vmem_to_hbm [thread:$0]  %s245_s29, 32, %s247_s9, [#allocation4]  }
 0x2bc   :  { %454 = dma.done.wait [#allocation4], 32  }
 0x2bd   :  { %455 = vsyncadd [#allocation4], 4294967264 }
 0x2be   :  { %456 = dma.done.wait [#allocation12], 32  }
 0x2bf   :  { %457 = vsyncadd [#allocation12], 4294967264 }
 0x2c0   :  { %269 = vsyncpa [#allocation3], 1 }
 0x2c1   :  { %270 = vsyncpa [#allocation6], 1 }
 0x2c2   :  { %271 = vsyncpa [#allocation9], 1 }
 0x2c3   :  { %272 = vsyncpa [#allocation4], 1 }
 0x2c4   :  { %273 = vsyncpa [#allocation12], 1 }

</bundles_post_ra>
